<compile_context>
chip_gen: v5e
topology: v5e:2x2
jax: 0.10.0
libtpu: 0.0.40
codegen_flags: <defaults>
</compile_context>

<pallas_src>
import functools

import jax
import jax.numpy as jnp
from jax.experimental import pallas as pl
from jax.experimental.pallas import tpu as pltpu


def _round_up(x, m):
    return (x + m - 1) // m * m


def _classwise_pool_kernel(x_ref, o_ref, *, num_maps, inv_num_maps):
    # x_ref: (TG, num_maps, HW)   o_ref: (TG, HW)
    acc = x_ref[:, 0, :].astype(jnp.float32)
    for m in range(1, num_maps):  # static, unrolled VALU add chain
        acc = acc + x_ref[:, m, :].astype(jnp.float32)
    o_ref[...] = (acc * inv_num_maps).astype(o_ref.dtype)


def class_wise_pool(x, num_maps, *, tg=None):
    """Pallas implementation of ClassWisePool.forward.

    x: (B, C, H, W), C must be a multiple of num_maps.
    returns: (B, C // num_maps, H, W) = per-group channel sum / num_maps.
    """
    B, C, H, W = x.shape
    if C % num_maps != 0:
        raise ValueError(
            "The number of channels has to be a multiple of the number of maps per class"
        )
    num_outputs = C // num_maps
    G = B * num_outputs
    HW = H * W

    itemsize = jnp.dtype(x.dtype).itemsize
    # Sublane packing multiple: 8 rows for 32-bit, 16 for bf16, 32 for int8/fp8.
    packing = 8 * max(1, 4 // itemsize)

    # Generation-aware VMEM budget (double-buffered in+out per grid step).
    try:
        vmem_cap = int(pltpu.get_tpu_info().vmem_capacity_bytes)
    except Exception:  # conservative fallback (v7x per-TC VMEM)
        vmem_cap = 64 * 1024 * 1024
    if vmem_cap >= 96 * 1024 * 1024:  # v5e / v6e (128 MiB physical)
        budget = 24 * 1024 * 1024
        vmem_limit_cap = 64 * 1024 * 1024
    else:  # v7x (64 MiB physical per TC)
        budget = 12 * 1024 * 1024
        vmem_limit_cap = 40 * 1024 * 1024

    # Per-group bytes held in VMEM (double-buffered input + output, real dtype).
    bytes_per_group = 2 * (num_maps + 1) * HW * itemsize

    if tg is None:
        tg = max(packing, (budget // max(bytes_per_group, 1)) // packing * packing)
        # Guarantee >= 2 grid steps when possible so v7x's two TensorCores
        # both get work (single axis is marked "parallel"); negligible cost
        # (~0.35 us extra step) on single-core v5e/v6e.
        if G >= 2 * packing:
            tg = min(tg, _round_up(pl.cdiv(G, 2), packing))
    else:
        if tg < G:  # keep user tile sublane-packing aligned
            tg = max(packing, tg // packing * packing)
    tg = min(tg, G)  # tg == G (full extent) is always a legal block dim
    grid = (pl.cdiv(G, tg),)

    # in + out double buffers (input dtype) + f32 accumulator temporaries.
    block_bytes = 2 * tg * (num_maps + 1) * HW * itemsize + tg * HW * 4
    vmem_limit = int(min(vmem_limit_cap, max(32 * 1024 * 1024, block_bytes * 5 // 4)))

    # Free views: pure dim merges, no data movement.
    x_3d = x.reshape(G, num_maps, HW)

    kernel = functools.partial(
        _classwise_pool_kernel,
        num_maps=num_maps,
        inv_num_maps=1.0 / num_maps,
    )

    cost = pl.CostEstimate(
        flops=(num_maps - 1) * G * HW,
        transcendentals=0,
        bytes_accessed=(G * num_maps * HW + G * HW) * itemsize,
    )

    out = pl.pallas_call(
        kernel,
        out_shape=jax.ShapeDtypeStruct((G, HW), x.dtype),
        grid_spec=pltpu.PrefetchScalarGridSpec(
            num_scalar_prefetch=0,
            grid=grid,
            in_specs=[
                # Last two dims at full extent -> (8,128) rule satisfied even
                # for unaligned HW like 14*14=196.
                pl.BlockSpec((tg, num_maps, HW), lambda g: (g, 0, 0)),
            ],
            out_specs=pl.BlockSpec((tg, HW), lambda g: (g, 0)),
        ),
        compiler_params=pltpu.CompilerParams(
            dimension_semantics=("parallel",),
            vmem_limit_bytes=vmem_limit,
        ),
        cost_estimate=cost,
    )(x_3d)

    return out.reshape(B, num_outputs, H, W)


def class_wise_pool_ref(x, num_maps):
    B, C, H, W = x.shape
    num_outputs = C // num_maps
    xf = x.astype(jnp.float32).reshape(B, num_outputs, num_maps, H, W)
    return (jnp.sum(xf, axis=2) / num_maps).astype(x.dtype)


if __name__ == "__main__":
    root = jax.random.PRNGKey(0)
    k1, k2, k3, k4 = jax.random.split(root, 4)

    # Case 1: demo shapes, G < packing -> single full-extent block.
    B, C, H, W, num_maps = 2, 8, 16, 16, 4
    x = jax.random.normal(k1, (B, C, H, W), dtype=jnp.float32)
    out = jax.block_until_ready(class_wise_pool(x, num_maps))
    ref = class_wise_pool_ref(x, num_maps)
    assert out.shape == (B, C // num_maps, H, W), out.shape
    assert jnp.allclose(out, ref, atol=1e-5, rtol=1e-5), "case 1 mismatch"

    # Case 2: realistic 14x14 feature maps (HW=196, not lane-aligned) with
    # enough groups for a 2-step grid.
    B, C, H, W, num_maps = 2, 32, 14, 14, 4
    x = jax.random.normal(k2, (B, C, H, W), dtype=jnp.float32)
    out = jax.block_until_ready(class_wise_pool(x, num_maps))
    ref = class_wise_pool_ref(x, num_maps)
    assert out.shape == (B, C // num_maps, H, W), out.shape
    assert jnp.allclose(out, ref, atol=1e-5, rtol=1e-5), "case 2 mismatch"

    # Case 3: explicit TG smaller than G (partial, masked final block).
    B, C, H, W, num_maps = 3, 20, 8, 16, 4
    x = jax.random.normal(k3, (B, C, H, W), dtype=jnp.float32)
    out = jax.block_until_ready(class_wise_pool(x, num_maps, tg=8))
    ref = class_wise_pool_ref(x, num_maps)
    assert out.shape == (B, C // num_maps, H, W), out.shape
    assert jnp.allclose(out, ref, atol=1e-5, rtol=1e-5), "case 3 mismatch"

    # Case 4: bf16 input (exercises dtype-aware sizing / sublane packing).
    B, C, H, W, num_maps = 2, 16, 14, 14, 4
    x = jax.random.normal(k4, (B, C, H, W), dtype=jnp.float32).astype(jnp.bfloat16)
    out = jax.block_until_ready(class_wise_pool(x, num_maps))
    ref = class_wise_pool_ref(x, num_maps)
    assert out.shape == (B, C // num_maps, H, W), out.shape
    assert jnp.allclose(out.astype(jnp.float32), ref.astype(jnp.float32),
                        atol=2e-2, rtol=2e-2), "case 4 mismatch"

    print("KERNEL_OK")
</pallas_src>

<mosaic_0001>
module attributes {stable_mosaic.version = 11 : i64} {
  func.func @_classwise_pool_kernel(%arg0: i32, %arg1: memref<4x4x256xf32, #tpu.memory_space<vmem>>, %arg2: memref<4x256xf32, #tpu.memory_space<vmem>>) attributes {dimension_semantics = [#tpu.dimension_semantics<parallel>], iteration_bounds = array<i64: 1>, scalar_prefetch = 0 : i64, scratch_operands = 0 : i64, tpu.core_type = #tpu.core_type<tc>, window_params = [{transform_indices = @transform_0, window_bounds = array<i64: 4, 4, 256>}, {transform_indices = @transform_1, window_bounds = array<i64: 4, 256>}]} {
    %c0 = arith.constant 0 : index
    %c0_0 = arith.constant 0 : index
    %c0_1 = arith.constant 0 : index
    %0 = vector.load %arg1[%c0, %c0_0, %c0_1] : memref<4x4x256xf32, #tpu.memory_space<vmem>>, vector<4x1x256xf32>
    %1 = vector.shape_cast %0 : vector<4x1x256xf32> to vector<4x256xf32>
    %c0_2 = arith.constant 0 : index
    %c1 = arith.constant 1 : index
    %c0_3 = arith.constant 0 : index
    %2 = vector.load %arg1[%c0_2, %c1, %c0_3] : memref<4x4x256xf32, #tpu.memory_space<vmem>>, vector<4x1x256xf32>
    %3 = vector.shape_cast %2 : vector<4x1x256xf32> to vector<4x256xf32>
    %4 = arith.addf %1, %3 : vector<4x256xf32>
    %c0_4 = arith.constant 0 : index
    %c2 = arith.constant 2 : index
    %c0_5 = arith.constant 0 : index
    %5 = vector.load %arg1[%c0_4, %c2, %c0_5] : memref<4x4x256xf32, #tpu.memory_space<vmem>>, vector<4x1x256xf32>
    %6 = vector.shape_cast %5 : vector<4x1x256xf32> to vector<4x256xf32>
    %7 = arith.addf %4, %6 : vector<4x256xf32>
    %c0_6 = arith.constant 0 : index
    %c3 = arith.constant 3 : index
    %c0_7 = arith.constant 0 : index
    %8 = vector.load %arg1[%c0_6, %c3, %c0_7] : memref<4x4x256xf32, #tpu.memory_space<vmem>>, vector<4x1x256xf32>
    %9 = vector.shape_cast %8 : vector<4x1x256xf32> to vector<4x256xf32>
    %10 = arith.addf %7, %9 : vector<4x256xf32>
    %cst = arith.constant 2.500000e-01 : f32
    %11 = vector.broadcast %cst : f32 to vector<4x256xf32>
    %12 = arith.mulf %10, %11 : vector<4x256xf32>
    %c0_8 = arith.constant 0 : index
    %c0_9 = arith.constant 0 : index
    %13 = vector.load %arg2[%c0_8, %c0_9] : memref<4x256xf32, #tpu.memory_space<vmem>>, vector<4x256xf32>
    tpu.vector_store %arg2[%c0_8, %c0_9], %12 {strides = array<i32>} : memref<4x256xf32, #tpu.memory_space<vmem>>, vector<4x256xf32>,
    return
  }
  func.func @transform_0(%arg0: i32) -> (i32, i32, i32) {
    %c0_i32 = arith.constant 0 : i32
    %c0_i32_0 = arith.constant 0 : i32
    %c0_i32_1 = arith.constant 0 : i32
    return %arg0, %c0_i32, %c0_i32_0 : i32, i32, i32
  }
  func.func @transform_1(%arg0: i32) -> (i32, i32) {
    %c0_i32 = arith.constant 0 : i32
    %c0_i32_0 = arith.constant 0 : i32
    return %arg0, %c0_i32 : i32, i32
  }
}

</mosaic_0001>

<bundles_post_ra>
// kernel: tpu_custom_call.1
= control target key start
LH: loop header
LB: loop body
LE: loop exit
PB: predicated region body
PF: predicated region fallthrough
CT: control target
= control target key end

     0   :  { %6 = vsyncpa [#allocation3], 0  ;;  %s179_s0 = inlined_call_operand.hbm [shape: f32[4,4,256], index: 0, kind: input, shape index: {}]   ;;  %s180_s1 = inlined_call_operand.hbm [shape: f32[4,256], index: 1, kind: output, shape index: {}]  }
   0x1   :  { %7 = vsyncpa [#allocation4], 0  ;;  %s12_s8 = sshll.u32 %s179_s0, 4  ;;  %s159_s9 = smov [#allocation2]   ;;  %s13_s8 = int_to_ptr.hbm [resolvable:$true] %s12_s8 }
   0x2   :  { %s14_s10 = sshll.u32 %s159_s9, 4  ;;  %s160_s11 = smov 128   ;;  %s15_s10 = int_to_ptr.vmem [resolvable:$true] %s14_s10 }
   0x3   :  { %s161_s12 = smov 8  }
   0x4   :  { %20 = dma.hbm_to_vmem [thread:$0]  %s13_s8, 512, %s15_s10, [#allocation3], %s160_s11, %s160_s11, %s161_s12  }
   0x5   :  { %155 = dma.done.wait [#allocation3], 512  }
   0x6   :  { %156 = vsyncadd [#allocation3], 4294966784  ;;  %v25_v0 = vld [vmem:[#allocation2] ss:$4 sm:$0x3]  ;;  %s162_s0 = smov [#allocation5]  }
   0x7   :  { %v33_v1 = vld [vmem:[#allocation2 + $0x1] ss:$4 sm:$0x3]  ;;  %v45_v3 = vld [vmem:[#allocation2 + $0x2] ss:$4 sm:$0x3] }
   0x8   :  { %v40_v2 = vadd.f32 %v33_v1, %v25_v0  ;;  %v57_v4 = vld [vmem:[#allocation2 + $0x3] ss:$4 sm:$0x3]  ;;  %v27_v5 = vld [vmem:[#allocation2 + $0x8] ss:$4 sm:$0x3] }
   0x9   :  { %v35_v6 = vld [vmem:[#allocation2 + $0x9] ss:$4 sm:$0x3]  ;;  %v47_v9 = vld [vmem:[#allocation2 + $0xa] ss:$4 sm:$0x3] }
   0xa   :  { %v52_v7 = vadd.f32 %v45_v3, %v40_v2  ;;  %v41_v8 = vadd.f32 %v35_v6, %v27_v5  ;;  %v59_v10 = vld [vmem:[#allocation2 + $0xb] ss:$4 sm:$0x3]  ;;  %v29_v11 = vld [vmem:[#allocation2 + $0x10] ss:$4 sm:$0x3] }
   0xb   :  { %v37_v12 = vld [vmem:[#allocation2 + $0x11] ss:$4 sm:$0x3]  ;;  %v49_v16 = vld [vmem:[#allocation2 + $0x12] ss:$4 sm:$0x3] }
   0xc   :  { %v64_v13 = vadd.f32 %v57_v4, %v52_v7  ;;  %v53_v14 = vadd.f32 %v47_v9, %v41_v8  ;;  %v42_v15 = vadd.f32 %v37_v12, %v29_v11  ;;  %v61_v17 = vld [vmem:[#allocation2 + $0x13] ss:$4 sm:$0x3]  ;;  %v31_v18 = vld [vmem:[#allocation2 + $0x18] ss:$4 sm:$0x3] }
   0xd   :  { %v39_v19 = vld [vmem:[#allocation2 + $0x19] ss:$4 sm:$0x3]  ;;  %v51_v24 = vld [vmem:[#allocation2 + $0x1a] ss:$4 sm:$0x3] }
   0xe   :  { %v68_v20 = vmul.f32 0.25, %v64_v13  ;;  %v65_v21 = vadd.f32 %v59_v10, %v53_v14  ;;  %v54_v22 = vadd.f32 %v49_v16, %v42_v15  ;;  %v43_v23 = vadd.f32 %v39_v19, %v31_v18  ;;  %v63_v25 = vld [vmem:[#allocation2 + $0x1b] ss:$4 sm:$0x3]  ;;  %s91_s13 = sshll.u32 %s162_s0, 4  ;;  %s93_s16 = sshll.u32 %s180_s1, 4  ;;  %s92_s13 = int_to_ptr.vmem [resolvable:$true] %s91_s13  ;;  %s94_s16 = int_to_ptr.hbm [resolvable:$true] %s93_s16 }
  0x10   :  { %76 = vst [vmem:[#allocation1] ss:$4 sm:$0xff] %v68_v20  ;;  %v69_v26 = vmul.f32 0.25, %v65_v21  ;;  %v66_v27 = vadd.f32 %v61_v17, %v54_v22  ;;  %v55_v28 = vadd.f32 %v51_v24, %v43_v23 }
  0x12   :  { %78 = vst [vmem:[#allocation1 + $0x1] ss:$4 sm:$0xff] %v69_v26  ;;  %v70_v29 = vmul.f32 0.25, %v66_v27  ;;  %v67_v30 = vadd.f32 %v63_v25, %v55_v28 }
  0x14   :  { %80 = vst [vmem:[#allocation1 + $0x2] ss:$4 sm:$0xff] %v70_v29  ;;  %v71_v31 = vmul.f32 0.25, %v67_v30 }
  0x16   :  { %82 = vst [vmem:[#allocation1 + $0x3] ss:$4 sm:$0xff] %v71_v31 }
  0x1d   :  { %v83_v32 = vld [vmem:[#allocation1] sm:$0xff] }
  0x1e   :  { %85 = vst [vmem:[#allocation5] sm:$0xff] %v83_v32 }
  0x1f   :  { %96 = dma.vmem_to_hbm [thread:$0]  %s92_s13, 128, %s94_s16, [#allocation4]  }
  0x20   :  { %157 = dma.done.wait [#allocation4], 128  }
  0x21   :  { %158 = vsyncadd [#allocation4], 4294967168 }
  0x22   :  { %101 = vsyncpa [#allocation3], 1 }
  0x23   :  { %102 = vsyncpa [#allocation4], 1 }

</bundles_post_ra>
